<compile_context>
chip_gen: v7x
topology: tpu7x:2x2x1
jax: 0.10.0
libtpu: 0.0.40
codegen_flags: <defaults>
</compile_context>

<pallas_src>
import jax
import jax.numpy as jnp
from jax.experimental import pallas as pl
from jax.experimental.pallas import tpu as pltpu

LANE = 128
SUBLANE = 8


def _round_up(n, m):
    return ((n + m - 1) // m) * m


def _leaky_relu(v, negative_slope=0.8):
    return jnp.where(v >= 0, v, negative_slope * v)


def _make_kernel(n_layers):
    """Fused n-layer MLP: (Linear + LeakyReLU(0.8) [+ Dropout=id]) x (n-1) + Linear."""

    def kernel(x_ref, *refs):
        o_ref = refs[-1]
        wb_refs = refs[:-1]
        h = x_ref[...].astype(jnp.float32)
        for li in range(n_layers):
            w = wb_refs[2 * li][...]
            b = wb_refs[2 * li + 1][...]
            # TODO(synk): cast h/w to bf16 here (keeping f32 accumulation) for a
            #             ~2x bandwidth/matmul win if the 1e-5 f32 tolerance can
            #             be relaxed.
            h = jnp.dot(h, w, preferred_element_type=jnp.float32) + b
            if li < n_layers - 1:
                h = _leaky_relu(h)
                # TODO(synk): Dropout is identity here (eval semantics);
                #             training-mode dropout would use pltpu.prng_seed /
                #             pltpu.prng_random_bits.
        o_ref[...] = h.astype(o_ref.dtype)

    return kernel


def _pad_params_to_lanes(params):
    """Zero-pad hidden (intermediate) feature dims to multiples of 128 lanes.

    The first layer's input dim and the last layer's output dim are left
    untouched so HBM traffic for x / out is unchanged.  The padding is exact:
    padded hidden activations are exactly zero (zero bias + zero weight
    columns) and feed zero weight rows in the next layer.
    """
    n = len(params)
    padded = []
    prev_out = int(params[0][0].shape[0])
    for i, (w, b) in enumerate(params):
        d_in, d_out = int(w.shape[0]), int(w.shape[1])
        in_p = prev_out
        out_p = d_out if i == n - 1 else _round_up(d_out, LANE)
        w_p = jnp.zeros((in_p, out_p), w.dtype).at[:d_in, :d_out].set(w)
        b_p = jnp.zeros((1, out_p), b.dtype).at[:, :d_out].set(b)
        padded.append((w_p, b_p))
        prev_out = out_p
    return padded


def deep_component_forward(x, params, *, batch_tile=512):
    """Forward pass of DeepComponent.

    x: (B, input_dim) float32.
    params: list of (w, b) per Linear layer; w is (in_features, out_features),
            b is (1, out_features).
    batch_tile: rows per grid step (rounded to a multiple of 8, clamped to B).
    """
    B, D_in = x.shape
    n_layers = len(params)

    # Lane-pad the hidden dims (free filler for this HBM-bound kernel).
    pparams = _pad_params_to_lanes(params)

    # Large batch tile for HBM-roofline-friendly DMAs; multiple of 8 sublanes;
    # clamped so tiny batches don't over-pad.  VMEM usage stays tiny (tens of
    # KB per tile buffer + ~160 KB resident weights), well under even v7x's
    # 32 MiB scoped limit.
    bt = _round_up(min(batch_tile, max(B, SUBLANE)), SUBLANE)
    B_pad = _round_up(B, bt)
    x_in = x if B_pad == B else jnp.pad(x, ((0, B_pad - B), (0, 0)))
    grid = (B_pad // bt,)

    in_specs = [pl.BlockSpec((bt, D_in), lambda i: (i, 0))]
    flat_params = []
    for w, b in pparams:
        # Constant index maps -> resident VMEM operands, not re-streamed.
        in_specs.append(pl.BlockSpec(w.shape, lambda i: (0, 0)))
        in_specs.append(pl.BlockSpec(b.shape, lambda i: (0, 0)))
        flat_params.extend([w, b])
    out_spec = pl.BlockSpec((bt, D_in), lambda i: (i, 0))

    # Advisory cost hint: this call is bandwidth-bound on x/out traffic.
    flops = 2 * B_pad * sum(int(w.shape[0]) * int(w.shape[1]) for w, _ in pparams)
    bytes_accessed = (
        B_pad * D_in * x.dtype.itemsize * 2
        + sum(int(w.size) * w.dtype.itemsize + int(b.size) * b.dtype.itemsize
              for w, b in pparams)
    )
    cost = pl.CostEstimate(flops=flops, transcendentals=0,
                           bytes_accessed=bytes_accessed)

    out = pl.pallas_call(
        _make_kernel(n_layers),
        out_shape=jax.ShapeDtypeStruct((B_pad, D_in), x.dtype),
        grid_spec=pltpu.PrefetchScalarGridSpec(
            num_scalar_prefetch=0,
            grid=grid,
            in_specs=in_specs,
            out_specs=out_spec,
        ),
        compiler_params=pltpu.CompilerParams(
            dimension_semantics=("parallel",)),
        cost_estimate=cost,
    )(x_in, *flat_params)

    return out if B_pad == B else out[:B]


def init_params(key, input_dim, hidden_dims):
    """Deterministic init matching DeepComponent(input_dim, hidden_dims, dropout)."""
    dims = [input_dim] + hidden_dims + hidden_dims[::-1][1:] + [input_dim]
    params = []
    for i in range(len(dims) - 1):
        d_in, d_out = dims[i], dims[i + 1]
        key, kw, kb = jax.random.split(key, 3)
        bound = 1.0 / jnp.sqrt(jnp.float32(d_in))
        w = jax.random.uniform(kw, (d_in, d_out), jnp.float32, -bound, bound)
        b = jax.random.uniform(kb, (1, d_out), jnp.float32, -bound, bound)
        params.append((w, b))
    return params


def reference_forward(x, params):
    """Pure-JAX reference of the same forward pass (unpadded params)."""
    h = x
    n = len(params)
    for idx, (w, b) in enumerate(params):
        h = h @ w + b
        if idx < n - 1:
            h = jnp.where(h >= 0, h, 0.8 * h)
    return h


if __name__ == "__main__":
    key = jax.random.PRNGKey(0)
    input_dim = 32
    hidden_dims = [64, 16]     # layer widths: 32 -> 64 -> 16 -> 64 -> 32
    batch = 200                # not a tile multiple: exercises the padded remainder path

    k_x, k_p = jax.random.split(key)
    x = jax.random.normal(k_x, (batch, input_dim), jnp.float32)
    params = init_params(k_p, input_dim, hidden_dims)

    ref = reference_forward(x, params)

    # Multi-step grid (4 tiles of 64 rows): exercises pipelining + megacore sharding.
    out = jax.block_until_ready(deep_component_forward(x, params, batch_tile=64))
    assert out.shape == (batch, input_dim)
    assert jnp.allclose(out, ref, atol=1e-5, rtol=1e-5), "mismatch vs JAX reference (tiled)"

    # Default large-tile path (tile clamps to the small demo batch -> single step).
    out2 = jax.block_until_ready(deep_component_forward(x, params))
    assert jnp.allclose(out2, ref, atol=1e-5, rtol=1e-5), "mismatch vs JAX reference (default)"

    print("KERNEL_OK")
</pallas_src>

<mosaic_0001>
module attributes {stable_mosaic.version = 11 : i64} {
  func.func @kernel(%arg0: i32, %arg1: memref<64x32xf32, #tpu.memory_space<vmem>>, %arg2: memref<32x128xf32, #tpu.memory_space<vmem>>, %arg3: memref<1x128xf32, #tpu.memory_space<vmem>>, %arg4: memref<128x128xf32, #tpu.memory_space<vmem>>, %arg5: memref<1x128xf32, #tpu.memory_space<vmem>>, %arg6: memref<128x128xf32, #tpu.memory_space<vmem>>, %arg7: memref<1x128xf32, #tpu.memory_space<vmem>>, %arg8: memref<128x32xf32, #tpu.memory_space<vmem>>, %arg9: memref<1x32xf32, #tpu.memory_space<vmem>>, %arg10: memref<64x32xf32, #tpu.memory_space<vmem>>) attributes {dimension_semantics = [#tpu.dimension_semantics<parallel>], iteration_bounds = array<i64: 4>, scalar_prefetch = 0 : i64, scratch_operands = 0 : i64, tpu.core_type = #tpu.core_type<tc>, window_params = [{transform_indices = @transform_0, window_bounds = array<i64: 64, 32>}, {pipeline_mode = #tpu.pipeline_mode<synchronous>, transform_indices = @transform_1, window_bounds = array<i64: 32, 128>}, {pipeline_mode = #tpu.pipeline_mode<synchronous>, transform_indices = @transform_2, window_bounds = array<i64: 1, 128>}, {pipeline_mode = #tpu.pipeline_mode<synchronous>, transform_indices = @transform_3, window_bounds = array<i64: 128, 128>}, {pipeline_mode = #tpu.pipeline_mode<synchronous>, transform_indices = @transform_4, window_bounds = array<i64: 1, 128>}, {pipeline_mode = #tpu.pipeline_mode<synchronous>, transform_indices = @transform_5, window_bounds = array<i64: 128, 128>}, {pipeline_mode = #tpu.pipeline_mode<synchronous>, transform_indices = @transform_6, window_bounds = array<i64: 1, 128>}, {pipeline_mode = #tpu.pipeline_mode<synchronous>, transform_indices = @transform_7, window_bounds = array<i64: 128, 32>}, {pipeline_mode = #tpu.pipeline_mode<synchronous>, transform_indices = @transform_8, window_bounds = array<i64: 1, 32>}, {transform_indices = @transform_9, window_bounds = array<i64: 64, 32>}]} {
    %c0 = arith.constant 0 : index
    %c0_0 = arith.constant 0 : index
    %0 = vector.load %arg1[%c0, %c0_0] : memref<64x32xf32, #tpu.memory_space<vmem>>, vector<64x32xf32>
    %c0_1 = arith.constant 0 : index
    %c0_2 = arith.constant 0 : index
    %1 = vector.load %arg2[%c0_1, %c0_2] : memref<32x128xf32, #tpu.memory_space<vmem>>, vector<32x128xf32>
    %c0_3 = arith.constant 0 : index
    %c0_4 = arith.constant 0 : index
    %2 = vector.load %arg3[%c0_3, %c0_4] : memref<1x128xf32, #tpu.memory_space<vmem>>, vector<1x128xf32>
    %cst = arith.constant dense<0.000000e+00> : vector<64x128xf32>
    %3 = tpu.matmul %0, %1, %cst {dimension_numbers = #tpu.dot_dimension_numbers<[1], [0], [0], [1], [0, 0, 1, 1], [], []>} : vector<64x32xf32>, vector<32x128xf32>, vector<64x128xf32> -> vector<64x128xf32>
    %4 = vector.broadcast %2 : vector<1x128xf32> to vector<64x128xf32>
    %5 = arith.addf %3, %4 : vector<64x128xf32>
    %cst_5 = arith.constant 0.000000e+00 : f32
    %6 = vector.broadcast %cst_5 : f32 to vector<64x128xf32>
    %7 = arith.cmpf oge, %5, %6 : vector<64x128xf32>
    %cst_6 = arith.constant 8.000000e-01 : f32
    %8 = vector.broadcast %cst_6 : f32 to vector<64x128xf32>
    %9 = arith.mulf %8, %5 : vector<64x128xf32>
    %10 = arith.select %7, %5, %9 : vector<64x128xi1>, vector<64x128xf32>
    %c0_7 = arith.constant 0 : index
    %c0_8 = arith.constant 0 : index
    %11 = vector.load %arg4[%c0_7, %c0_8] : memref<128x128xf32, #tpu.memory_space<vmem>>, vector<128x128xf32>
    %c0_9 = arith.constant 0 : index
    %c0_10 = arith.constant 0 : index
    %12 = vector.load %arg5[%c0_9, %c0_10] : memref<1x128xf32, #tpu.memory_space<vmem>>, vector<1x128xf32>
    %cst_11 = arith.constant dense<0.000000e+00> : vector<64x128xf32>
    %13 = tpu.matmul %10, %11, %cst_11 {dimension_numbers = #tpu.dot_dimension_numbers<[1], [0], [0], [1], [0, 0, 1, 1], [], []>} : vector<64x128xf32>, vector<128x128xf32>, vector<64x128xf32> -> vector<64x128xf32>
    %14 = vector.broadcast %12 : vector<1x128xf32> to vector<64x128xf32>
    %15 = arith.addf %13, %14 : vector<64x128xf32>
    %cst_12 = arith.constant 0.000000e+00 : f32
    %16 = vector.broadcast %cst_12 : f32 to vector<64x128xf32>
    %17 = arith.cmpf oge, %15, %16 : vector<64x128xf32>
    %cst_13 = arith.constant 8.000000e-01 : f32
    %18 = vector.broadcast %cst_13 : f32 to vector<64x128xf32>
    %19 = arith.mulf %18, %15 : vector<64x128xf32>
    %20 = arith.select %17, %15, %19 : vector<64x128xi1>, vector<64x128xf32>
    %c0_14 = arith.constant 0 : index
    %c0_15 = arith.constant 0 : index
    %21 = vector.load %arg6[%c0_14, %c0_15] : memref<128x128xf32, #tpu.memory_space<vmem>>, vector<128x128xf32>
    %c0_16 = arith.constant 0 : index
    %c0_17 = arith.constant 0 : index
    %22 = vector.load %arg7[%c0_16, %c0_17] : memref<1x128xf32, #tpu.memory_space<vmem>>, vector<1x128xf32>
    %cst_18 = arith.constant dense<0.000000e+00> : vector<64x128xf32>
    %23 = tpu.matmul %20, %21, %cst_18 {dimension_numbers = #tpu.dot_dimension_numbers<[1], [0], [0], [1], [0, 0, 1, 1], [], []>} : vector<64x128xf32>, vector<128x128xf32>, vector<64x128xf32> -> vector<64x128xf32>
    %24 = vector.broadcast %22 : vector<1x128xf32> to vector<64x128xf32>
    %25 = arith.addf %23, %24 : vector<64x128xf32>
    %cst_19 = arith.constant 0.000000e+00 : f32
    %26 = vector.broadcast %cst_19 : f32 to vector<64x128xf32>
    %27 = arith.cmpf oge, %25, %26 : vector<64x128xf32>
    %cst_20 = arith.constant 8.000000e-01 : f32
    %28 = vector.broadcast %cst_20 : f32 to vector<64x128xf32>
    %29 = arith.mulf %28, %25 : vector<64x128xf32>
    %30 = arith.select %27, %25, %29 : vector<64x128xi1>, vector<64x128xf32>
    %c0_21 = arith.constant 0 : index
    %c0_22 = arith.constant 0 : index
    %31 = vector.load %arg8[%c0_21, %c0_22] : memref<128x32xf32, #tpu.memory_space<vmem>>, vector<128x32xf32>
    %c0_23 = arith.constant 0 : index
    %c0_24 = arith.constant 0 : index
    %32 = vector.load %arg9[%c0_23, %c0_24] : memref<1x32xf32, #tpu.memory_space<vmem>>, vector<1x32xf32>
    %cst_25 = arith.constant dense<0.000000e+00> : vector<64x32xf32>
    %33 = tpu.matmul %30, %31, %cst_25 {dimension_numbers = #tpu.dot_dimension_numbers<[1], [0], [0], [1], [0, 0, 1, 1], [], []>} : vector<64x128xf32>, vector<128x32xf32>, vector<64x32xf32> -> vector<64x32xf32>
    %34 = vector.broadcast %32 : vector<1x32xf32> to vector<64x32xf32>
    %35 = arith.addf %33, %34 : vector<64x32xf32>
    %c0_26 = arith.constant 0 : index
    %c0_27 = arith.constant 0 : index
    %36 = vector.load %arg10[%c0_26, %c0_27] : memref<64x32xf32, #tpu.memory_space<vmem>>, vector<64x32xf32>
    tpu.vector_store %arg10[%c0_26, %c0_27], %35 {strides = array<i32>} : memref<64x32xf32, #tpu.memory_space<vmem>>, vector<64x32xf32>,
    return
  }
  func.func @transform_0(%arg0: i32) -> (i32, i32) {
    %c0_i32 = arith.constant 0 : i32
    %c0_i32_0 = arith.constant 0 : i32
    return %arg0, %c0_i32 : i32, i32
  }
  func.func @transform_1(%arg0: i32) -> (i32, i32) {
    %c0_i32 = arith.constant 0 : i32
    %c0_i32_0 = arith.constant 0 : i32
    %c0_i32_1 = arith.constant 0 : i32
    return %c0_i32, %c0_i32_0 : i32, i32
  }
  func.func @transform_2(%arg0: i32) -> (i32, i32) {
    %c0_i32 = arith.constant 0 : i32
    %c0_i32_0 = arith.constant 0 : i32
    %c0_i32_1 = arith.constant 0 : i32
    return %c0_i32, %c0_i32_0 : i32, i32
  }
  func.func @transform_3(%arg0: i32) -> (i32, i32) {
    %c0_i32 = arith.constant 0 : i32
    %c0_i32_0 = arith.constant 0 : i32
    %c0_i32_1 = arith.constant 0 : i32
    return %c0_i32, %c0_i32_0 : i32, i32
  }
  func.func @transform_4(%arg0: i32) -> (i32, i32) {
    %c0_i32 = arith.constant 0 : i32
    %c0_i32_0 = arith.constant 0 : i32
    %c0_i32_1 = arith.constant 0 : i32
    return %c0_i32, %c0_i32_0 : i32, i32
  }
  func.func @transform_5(%arg0: i32) -> (i32, i32) {
    %c0_i32 = arith.constant 0 : i32
    %c0_i32_0 = arith.constant 0 : i32
    %c0_i32_1 = arith.constant 0 : i32
    return %c0_i32, %c0_i32_0 : i32, i32
  }
  func.func @transform_6(%arg0: i32) -> (i32, i32) {
    %c0_i32 = arith.constant 0 : i32
    %c0_i32_0 = arith.constant 0 : i32
    %c0_i32_1 = arith.constant 0 : i32
    return %c0_i32, %c0_i32_0 : i32, i32
  }
  func.func @transform_7(%arg0: i32) -> (i32, i32) {
    %c0_i32 = arith.constant 0 : i32
    %c0_i32_0 = arith.constant 0 : i32
    %c0_i32_1 = arith.constant 0 : i32
    return %c0_i32, %c0_i32_0 : i32, i32
  }
  func.func @transform_8(%arg0: i32) -> (i32, i32) {
    %c0_i32 = arith.constant 0 : i32
    %c0_i32_0 = arith.constant 0 : i32
    %c0_i32_1 = arith.constant 0 : i32
    return %c0_i32, %c0_i32_0 : i32, i32
  }
  func.func @transform_9(%arg0: i32) -> (i32, i32) {
    %c0_i32 = arith.constant 0 : i32
    %c0_i32_0 = arith.constant 0 : i32
    return %arg0, %c0_i32 : i32, i32
  }
}

</mosaic_0001>

<bundles_post_ra>
// kernel: tpu_custom_call.1
= control target key start
LH: loop header
LB: loop body
LE: loop exit
PB: predicated region body
PF: predicated region fallthrough
CT: control target
= control target key end

     0   :  { %s1450_s30 = smov 0   ;;  %s1686_s0 = inlined_call_operand.vmem [shape: f32[256,32], index: 0, kind: input, shape index: {}]   ;;  %s1687_s1 = inlined_call_operand.vmem [shape: f32[32,128], index: 1, kind: input, shape index: {}]   ;;  %s1688_s2 = inlined_call_operand.vmem [shape: f32[1,128], index: 2, kind: input, shape index: {}]   ;;  %s1689_s3 = inlined_call_operand.vmem [shape: f32[128,128], index: 3, kind: input, shape index: {}]   ;;  %s1690_s4 = inlined_call_operand.vmem [shape: f32[1,128], index: 4, kind: input, shape index: {}]   ;;  %s1691_s5 = inlined_call_operand.vmem [shape: f32[128,128], index: 5, kind: input, shape index: {}]   ;;  %s1692_s6 = inlined_call_operand.vmem [shape: f32[1,128], index: 6, kind: input, shape index: {}]   ;;  %s1693_s7 = inlined_call_operand.vmem [shape: f32[128,32], index: 7, kind: input, shape index: {}]   ;;  %s1694_s8 = inlined_call_operand.vmem [shape: f32[1,32], index: 8, kind: input, shape index: {}]   ;;  %s1695_s9 = inlined_call_operand.vmem [shape: f32[256,32], index: 9, kind: output, shape index: {}]  }
   0x1 LB: > { %s1005_s10 = sadd.s32 4294967295, %s1398_s30   ;;  %p1009_p0 = scmp.ge.s32.totalorder %s1398_s30, 1  ;;  %s1398_s30 = sphi %s1450_s30, %s19_s30  }
   0x2   : > { %p288_p1 = scmp.lt.s32.totalorder %s1398_s30, 5 }
   0x4   : > { %p289_p2 = pnand %p1009_p0, %p288_p1 }
   0x5   : > { %v344_v0 = vld [vmem:[%s1687_s1] sm:$0xff] (!%p289_p2)  ;;  %v345_v1 = vld [vmem:[%s1687_s1 + $0x8] sm:$0xff] (!%p289_p2)  ;;  %v346_v2 = vld [vmem:[%s1687_s1 + $0x10] sm:$0xff] (!%p289_p2)  ;;  %s1010_s17 = sshll.u32 (!%p289_p2), %s1005_s10, 3  ;;  %vm355_vm0 = vcmask (!%p289_p2), 261120  }
   0x6   : > { %292 = sbr.rel (%p289_p2) target bundleno = 903 (0x387), region = 56  ;;  %v1264_v3 = vpack.c.bf16 (!%p289_p2), %v345_v1, %v344_v0  ;;  %v347_v4 = vld [vmem:[%s1687_s1 + $0x18] sm:$0xff] (!%p289_p2)  ;;  %p325_p3 = scmp.lt.s32.totalorder (!%p289_p2), %s1010_s17, 31  ;;  %v509_v5 = vld [vmem:[%s1689_s3] sm:$0xff] (!%p289_p2)  ;;  %v510_v6 = vld [vmem:[%s1689_s3 + $0x8] sm:$0xff] (!%p289_p2) }
   0x7   : > { %v1268_v7 = vpack.c.bf16 (!%p289_p2), %v347_v4, %v346_v2  ;;  %v1272_v8 = vpack.c.bf16 (!%p289_p2), %v510_v6, %v509_v5  ;;  %v511_v9 = vld [vmem:[%s1689_s3 + $0x10] sm:$0xff] (!%p289_p2)  ;;  %v512_v10 = vld [vmem:[%s1689_s3 + $0x18] sm:$0xff] (!%p289_p2)  ;;  %v513_v12 = vld [vmem:[%s1689_s3 + $0x20] sm:$0xff] (!%p289_p2) }
   0x8   : > { %1265 = vmatprep.subr.bf16.mxu0 (!%p289_p2), %v1264_v3  ;;  %v1276_v11 = vpack.c.bf16 (!%p289_p2), %v512_v10, %v511_v9  ;;  %v514_v13 = vld [vmem:[%s1689_s3 + $0x28] sm:$0xff] (!%p289_p2)  ;;  %v515_v16 = vld [vmem:[%s1689_s3 + $0x30] sm:$0xff] (!%p289_p2)  ;;  %v516_v17 = vld [vmem:[%s1689_s3 + $0x38] sm:$0xff] (!%p289_p2) }
   0x9   : > { %1267 = vmatpush3.bf16.msra.mxu0 (!%p289_p2), %v1264_v3  ;;  %1273 = vmatprep.subr.bf16.mxu1 (!%p289_p2), %v1272_v8  ;;  %v1280_v14 = vpack.c.bf16 (!%p289_p2), %v514_v13, %v513_v12  ;;  %v1284_v20 = vpack.c.bf16 (!%p289_p2), %v516_v17, %v515_v16  ;;  %v517_v21 = vld [vmem:[%s1689_s3 + $0x40] sm:$0xff] (!%p289_p2)  ;;  %v518_v22 = vld [vmem:[%s1689_s3 + $0x48] sm:$0xff] (!%p289_p2)  ;;  %v519_v26 = vld [vmem:[%s1689_s3 + $0x50] sm:$0xff] (!%p289_p2) }
   0xa   : > { %1269 = vmatprep.subr.bf16.mxu0 (!%p289_p2), %v1268_v7  ;;  %1275 = vmatpush3.bf16.msra.mxu1 (!%p289_p2), %v1272_v8  ;;  %v1288_v25 = vpack.c.bf16 (!%p289_p2), %v518_v22, %v517_v21  ;;  %v520_v27 = vld [vmem:[%s1689_s3 + $0x58] sm:$0xff] (!%p289_p2)  ;;  %v521_v32 = vld [vmem:[%s1689_s3 + $0x60] sm:$0xff] (!%p289_p2)  ;;  %v522_v33 = vld [vmem:[%s1689_s3 + $0x68] sm:$0xff] (!%p289_p2) }
   0xb   : > { %1277 = vmatprep.subr.bf16.mxu1 (!%p289_p2), %v1276_v11  ;;  %v1292_v30 = vpack.c.bf16 (!%p289_p2), %v520_v27, %v519_v26  ;;  %v1296_v34 = vpack.c.bf16 (!%p289_p2), %v522_v33, %v521_v32  ;;  %v523_v35 = vld [vmem:[%s1689_s3 + $0x70] sm:$0xff] (!%p289_p2)  ;;  %v524_v36 = vld [vmem:[%s1689_s3 + $0x78] sm:$0xff] (!%p289_p2)  ;;  %v661_v38 = vld [vmem:[%s1691_s5] sm:$0xff] (!%p289_p2) }
   0xc   : > { %v1300_v37 = vpack.c.bf16 (!%p289_p2), %v524_v36, %v523_v35  ;;  %v662_v39 = vld [vmem:[%s1691_s5 + $0x8] sm:$0xff] (!%p289_p2)  ;;  %v663_v40 = vld [vmem:[%s1691_s5 + $0x10] sm:$0xff] (!%p289_p2)  ;;  %v664_v42 = vld [vmem:[%s1691_s5 + $0x18] sm:$0xff] (!%p289_p2) }
   0xd   : > { %s1697_s17 = smov (!%p325_p3, %s1010_s17), 31  ;;  %1271 = vmatpush3.bf16.msra.mxu0 %v1268_v7  ;;  %v1304_v41 = vpack.c.bf16 %v662_v39, %v661_v38  ;;  %v1308_v43 = vpack.c.bf16 %v664_v42, %v663_v40  ;;  %v665_v44 = vld [vmem:[%s1691_s5 + $0x20] sm:$0xff]  ;;  %v666_v45 = vld [vmem:[%s1691_s5 + $0x28] sm:$0xff]  ;;  %v667_v47 = vld [vmem:[%s1691_s5 + $0x30] sm:$0xff] }
   0xe   : > { %s1011_s12 = sshll.u32 %s1697_s17, 3  ;;  %1279 = vmatpush3.bf16.msra.mxu1 %v1276_v11  ;;  %v1312_v46 = vpack.c.bf16 %v666_v45, %v665_v44  ;;  %v668_v48 = vld [vmem:[%s1691_s5 + $0x38] sm:$0xff]  ;;  %v669_v50 = vld [vmem:[%s1691_s5 + $0x40] sm:$0xff]  ;;  %v670_v51 = vld [vmem:[%s1691_s5 + $0x48] sm:$0xff] }
   0xf   : > { %s1496_s15 = scalar_lea.vmem %s1686_s0, %s1011_s12  ;;  %1281 = vmatprep.subr.bf16.mxu1 %v1280_v14  ;;  %1305 = vmatprep.subr.bf16.mxu0 %v1304_v41  ;;  %v1316_v49 = vpack.c.bf16 %v668_v48, %v667_v47  ;;  %v1320_v52 = vpack.c.bf16 %v670_v51, %v669_v50  ;;  %v671_v53 = vld [vmem:[%s1691_s5 + $0x50] sm:$0xff]  ;;  %v672_v54 = vld [vmem:[%s1691_s5 + $0x58] sm:$0xff]  ;;  %v1014_v56 = vld [vmem:[%s1688_s2] ss:$0 sm:$0xff]  ;;  %s334_s21 = scalar_lea.vmem %s1695_s9, %s1011_s12 }
  0x10   : > { %v336_v15 = vld [vmem:[%s1496_s15] sm:$0xff]  ;;  %v337_v18 = vld [vmem:[%s1496_s15 + $0x8] sm:$0xff]  ;;  %v338_v19 = vld [vmem:[%s1496_s15 + $0x10] sm:$0xff]  ;;  %v1324_v55 = vpack.c.bf16 %v672_v54, %v671_v53 }
  0x11   : > { %1120 = vmatprep.mubr.msk.f32.mxu0 %vm355_vm0, %v336_v15  ;;  %v339_v23 = vld [vmem:[%s1496_s15 + $0x18] sm:$0xff]  ;;  %v340_v24 = vld [vmem:[%s1496_s15 + $0x20] sm:$0xff]  ;;  %v341_v28 = vld [vmem:[%s1496_s15 + $0x28] sm:$0xff] }
  0x12   : > { %1121 = vmatmul.mubr.msk.f32.vlgmr.msra.gmra.mrb[0].mxu0 %vm355_vm0, %v337_v18  ;;  %1283 = vmatpush3.bf16.msra.mxu1 %v1280_v14  ;;  %v342_v29 = vld [vmem:[%s1496_s15 + $0x30] sm:$0xff]  ;;  %v343_v31 = vld [vmem:[%s1496_s15 + $0x38] sm:$0xff]  ;;  %v674_v26 = vld [vmem:[%s1691_s5 + $0x68] sm:$0xff] }
  0x13   : > { %1123 = vmatprep.mubr.msk.f32.mxu0 %vm355_vm0, %v338_v19  ;;  %1285 = vmatprep.subr.bf16.mxu1 %v1284_v20  ;;  %v814_v32 = vld [vmem:[%s1693_s7 + $0x8] sm:$0xff]  ;;  %v815_v33 = vld [vmem:[%s1693_s7 + $0x10] sm:$0xff]  ;;  %v816_v35 = vld [vmem:[%s1693_s7 + $0x18] sm:$0xff] }
  0x14   : > { %1307 = vmatpush3.bf16.msra.mxu0 %v1304_v41  ;;  %v1340_v36 = vpack.c.bf16 %v816_v35, %v815_v33  ;;  %v818_v38 = vld [vmem:[%s1693_s7 + $0x28] sm:$0xff]  ;;  %v819_v40 = vld [vmem:[%s1693_s7 + $0x30] sm:$0xff]  ;;  %v820_v41 = vld [vmem:[%s1693_s7 + $0x38] sm:$0xff] }
  0x15   : > { %1309 = vmatprep.subr.bf16.mxu0 %v1308_v43  ;;  %v1622_v42 = vpack.c.bf16 %v820_v41, %v819_v40  ;;  %v822_v44 = vld [vmem:[%s1693_s7 + $0x48] sm:$0xff]  ;;  %v824_v47 = vld [vmem:[%s1693_s7 + $0x58] sm:$0xff] }
  0x16   : > { %1124 = vmatmul.mubr.msk.f32.gmra.mrb[2].mxu0 %vm355_vm0, %v339_v23  ;;  %1287 = vmatpush3.bf16.msra.mxu1 %v1284_v20 }
  0x17   : > { %1126 = vmatprep.mubr.msk.f32.mxu0 %vm355_vm0, %v340_v24  ;;  %1289 = vmatprep.subr.bf16.mxu1 %v1288_v25 }
  0x18   : > { %1311 = vmatpush3.bf16.msra.mxu0 %v1308_v43  ;;  %v821_v43 = vld [vmem:[%s1693_s7 + $0x40] sm:$0xff] }
  0x19   : > { %1313 = vmatprep.subr.bf16.mxu0 %v1312_v46  ;;  %v1632_v45 = vpack.c.bf16 %v822_v44, %v821_v43 }
  0x1a   : > { %1127 = vmatmul.mubr.msk.f32.gmra.mrb[4].mxu0 %vm355_vm0, %v341_v28  ;;  %1291 = vmatpush3.bf16.msra.mxu1 %v1288_v25  ;;  %v673_v25 = vld [vmem:[%s1691_s5 + $0x60] sm:$0xff]  ;;  %v675_v28 = vld [vmem:[%s1691_s5 + $0x70] sm:$0xff] }
  0x1b   : > { %1129 = vmatprep.mubr.msk.f32.mxu0 %vm355_vm0, %v342_v29  ;;  %1293 = vmatprep.subr.bf16.mxu1 %v1292_v30  ;;  %v1328_v27 = vpack.c.bf16 %v674_v26, %v673_v25  ;;  %v676_v29 = vld [vmem:[%s1691_s5 + $0x78] sm:$0xff] }
  0x1c   : > { %1315 = vmatpush3.bf16.msra.mxu0 %v1312_v46  ;;  %v823_v46 = vld [vmem:[%s1693_s7 + $0x50] sm:$0xff] }
  0x1d   : > { %1317 = vmatprep.subr.bf16.mxu0 %v1316_v49  ;;  %v1356_v48 = vpack.c.bf16 %v824_v47, %v823_v46 }
  0x1e   : > { %1130 = vmatmul.mubr.msk.f32.gmra.mrb[6].mxu0 %vm355_vm0, %v343_v31  ;;  %1295 = vmatpush3.bf16.msra.mxu1 %v1292_v30  ;;  %v1332_v30 = vpack.c.bf16 %v676_v29, %v675_v28  ;;  %v813_v31 = vld [vmem:[%s1693_s7] sm:$0xff] }
  0x1f   : > { %1297 = vmatprep.subr.bf16.mxu1 %v1296_v34 }
  0x20   : > { %1319 = vmatpush3.bf16.msra.mxu0 %v1316_v49  ;;  %v1023_v49 = vld [vmem:[%s1690_s4] ss:$0 sm:$0xff] }
  0x21   : > { %1321 = vmatprep.subr.bf16.mxu0 %v1320_v52 }
  0x22   : > { %1299 = vmatpush3.bf16.msra.mxu1 %v1296_v34  ;;  %v1336_v34 = vpack.c.bf16 %v814_v32, %v813_v31 }
  0x23   : > { %1301 = vmatprep.subr.bf16.mxu1 %v1300_v37 }
  0x24   : > { %1323 = vmatpush3.bf16.msra.mxu0 %v1320_v52 }
  0x25   : > { %1325 = vmatprep.subr.bf16.mxu0 %v1324_v55 }
  0x26   : > { %1303 = vmatpush3.bf16.msra.mxu1 %v1300_v37  ;;  %v817_v37 = vld [vmem:[%s1693_s7 + $0x20] sm:$0xff] }
  0x27   : > { %1368 = vmatprep.subr.bf16.mxu1 %v1336_v34  ;;  %v1613_v39 = vpack.c.bf16 %v818_v38, %v817_v37 }
  0x28   : > { %1327 = vmatpush3.bf16.msra.mxu0 %v1324_v55 }
  0x29   : > { %1329 = vmatprep.subr.bf16.mxu0 %v1328_v27 }
  0x2c   : > { %1331 = vmatpush3.bf16.msra.mxu0 %v1328_v27 }
  0x2d   : > { %1333 = vmatprep.subr.bf16.mxu0 %v1332_v30 }
  0x30   : > { %1335 = vmatpush3.bf16.msra.mxu0 %v1332_v30 }
  0x31   : > { %1337 = vmatprep.subr.bf16.mxu0 %v1336_v34 }
  0xe5   : > { %v1122_v57 = vpop.f32.mrb[0].mxu0 }
  0xe6   : > { %v452_v58 = vadd.f32 %v1122_v57, %v1014_v56  ;;  %v446_v59 = vpop.f32.mrb[1].mxu0 }
  0xe7   : > { %v447_v60 = vadd.f32 %v1014_v56, %v446_v59 }
  0xe8   : > { %v494_v61 = vmul.f32 0.8, %v452_v58  ;;  %vm486_vm2 = vcmp.ge.f32.partialorder %v452_v58, 0.0 }
  0xe9   : > { %v1125_v62 = vpop.f32.mrb[2].mxu0  ;;  %vm485_vm1 = vcmp.ge.f32.partialorder %v447_v60, 0.0  ;;  %v493_v63 = vmul.f32 0.8, %v447_v60 }
  0xea   : > { %v462_v0 = vadd.f32 %v1125_v62, %v1014_v56  ;;  %v456_v1 = vpop.f32.mrb[3].mxu0  ;;  %v502_v5 = vsel %vm486_vm2, %v452_v58, %v494_v61 }
  0xeb   : > { %v457_v2 = vadd.f32 %v1014_v56, %v456_v1  ;;  %v501_v3 = vsel %vm485_vm1, %v447_v60, %v493_v63 }
  0xec   : > { %v496_v4 = vmul.f32 0.8, %v462_v0  ;;  %1164 = vmatprep.mubr.f32.mxu1 %v501_v3  ;;  %vm488_vm4 = vcmp.ge.f32.partialorder %v462_v0, 0.0 }
  0xed   : > { %v495_v6 = vmul.f32 0.8, %v457_v2  ;;  %v1128_v7 = vpop.f32.mrb[4].mxu0  ;;  %1165 = vmatmul.mubr.f32.vlgmr.msra.gmra.mrb[0].mxu1 %v502_v5  ;;  %vm487_vm3 = vcmp.ge.f32.partialorder %v457_v2, 0.0 }
  0xee   : > { %v472_v8 = vadd.f32 %v1128_v7, %v1014_v56  ;;  %v466_v9 = vpop.f32.mrb[5].mxu0  ;;  %v504_v13 = vsel %vm488_vm4, %v462_v0, %v496_v4  ;;  %1376 = vmatpush3.bf16.msra.mxu1 %v1336_v34 }
  0xef   : > { %v467_v10 = vadd.f32 %v1014_v56, %v466_v9  ;;  %v503_v11 = vsel %vm487_vm3, %v457_v2, %v495_v6  ;;  %1369 = vmatprep.subr.bf16.mxu1 %v1340_v36 }
  0xf0   : > { %v498_v12 = vmul.f32 0.8, %v472_v8  ;;  %1167 = vmatprep.mubr.f32.mxu1 %v503_v11  ;;  %vm490_vm6 = vcmp.ge.f32.partialorder %v472_v8, 0.0 }
  0xf1   : > { %v497_v14 = vmul.f32 0.8, %v467_v10  ;;  %v1131_v15 = vpop.f32.mrb[6].mxu0  ;;  %1168 = vmatmul.mubr.f32.gmra.mrb[2].mxu1 %v504_v13  ;;  %vm489_vm5 = vcmp.ge.f32.partialorder %v467_v10, 0.0 }
  0xf2   : > { %v482_v16 = vadd.f32 %v1131_v15, %v1014_v56  ;;  %v476_v17 = vpop.f32.mrb[7].mxu0  ;;  %v506_v21 = vsel %vm490_vm6, %v472_v8, %v498_v12  ;;  %1377 = vmatpush3.bf16.msra.mxu1 %v1340_v36 }
  0xf3   : > { %v477_v18 = vadd.f32 %v1014_v56, %v476_v17  ;;  %v505_v19 = vsel %vm489_vm5, %v467_v10, %v497_v14  ;;  %1370 = vmatprep.subr.bf16.mxu1 %v1613_v39 }
  0xf4   : > { %v500_v20 = vmul.f32 0.8, %v482_v16  ;;  %1170 = vmatprep.mubr.f32.mxu1 %v505_v19  ;;  %vm492_vm8 = vcmp.ge.f32.partialorder %v482_v16, 0.0  ;;  %v826_v19 = vld [vmem:[%s1693_s7 + $0x68] sm:$0xff] }
  0xf5   : > { %v499_v22 = vmul.f32 0.8, %v477_v18  ;;  %1171 = vmatmul.mubr.f32.gmra.mrb[4].mxu1 %v506_v21  ;;  %vm491_vm7 = vcmp.ge.f32.partialorder %v477_v18, 0.0  ;;  %v827_v21 = vld [vmem:[%s1693_s7 + $0x70] sm:$0xff] }
  0xf6   : > { %v508_v24 = vsel %vm492_vm8, %v482_v16, %v500_v20  ;;  %1378 = vmatpush3.bf16.msra.mxu1 %v1613_v39 }
  0xf7   : > { %v507_v23 = vsel %vm491_vm7, %v477_v18, %v499_v22  ;;  %1371 = vmatprep.subr.bf16.mxu1 %v1622_v42  ;;  %v825_v18 = vld [vmem:[%s1693_s7 + $0x60] sm:$0xff]  ;;  %v828_v22 = vld [vmem:[%s1693_s7 + $0x78] sm:$0xff] }
  0xf8   : > { %1173 = vmatprep.mubr.f32.mxu1 %v507_v23  ;;  %v1360_v20 = vpack.c.bf16 %v826_v19, %v825_v18  ;;  %v1364_v23 = vpack.c.bf16 %v828_v22, %v827_v21 }
  0xf9   : > { %1174 = vmatmul.mubr.f32.gmra.mrb[6].mxu1 %v508_v24  ;;  %v1024_v24 = vld [vmem:[%s1692_s6] ss:$0 sm:$0xff] }
  0xfa   : > { %1379 = vmatpush3.bf16.msra.mxu1 %v1622_v42 }
  0xfb   : > { %1372 = vmatprep.subr.bf16.mxu1 %v1632_v45 }
  0xfe   : > { %1380 = vmatpush3.bf16.msra.mxu1 %v1632_v45 }
  0xff   : > { %1373 = vmatprep.subr.bf16.mxu1 %v1356_v48 }
 0x102   : > { %1381 = vmatpush3.bf16.msra.mxu1 %v1356_v48 }
 0x103   : > { %1374 = vmatprep.subr.bf16.mxu1 %v1360_v20 }
 0x106   : > { %1382 = vmatpush3.bf16.msra.mxu1 %v1360_v20 }
 0x107   : > { %1375 = vmatprep.subr.bf16.mxu1 %v1364_v23 }
 0x10a   : > { %1383 = vmatpush3.bf16.msra.mxu1 %v1364_v23 }
 0x1c0   : > { %v1166_v50 = vpop.f32.mrb[0].mxu1 }
 0x1c1   : > { %v604_v51 = vadd.f32 %v1166_v50, %v1023_v49  ;;  %v598_v52 = vpop.f32.mrb[1].mxu1 }
 0x1c2   : > { %v599_v53 = vadd.f32 %v1023_v49, %v598_v52 }
 0x1c3   : > { %v646_v54 = vmul.f32 0.8, %v604_v51  ;;  %vm638_vm9 = vcmp.ge.f32.partialorder %v604_v51, 0.0 }
 0x1c4   : > { %v645_v55 = vmul.f32 0.8, %v599_v53  ;;  %v1169_v56 = vpop.f32.mrb[2].mxu1  ;;  %vm637_vm10 = vcmp.ge.f32.partialorder %v599_v53, 0.0 }
 0x1c5   : > { %v614_v57 = vadd.f32 %v1169_v56, %v1023_v49  ;;  %v608_v58 = vpop.f32.mrb[3].mxu1  ;;  %v654_v61 = vsel %vm638_vm9, %v604_v51, %v646_v54 }
 0x1c6   : > { %v609_v59 = vadd.f32 %v1023_v49, %v608_v58  ;;  %v653_v60 = vsel %vm637_vm10, %v599_v53, %v645_v55 }
 0x1c7   : > { %v648_v62 = vmul.f32 0.8, %v614_v57  ;;  %1208 = vmatprep.mubr.f32.mxu0 %v653_v60  ;;  %vm640_vm12 = vcmp.ge.f32.partialorder %v614_v57, 0.0 }
 0x1c8   : > { %v647_v63 = vmul.f32 0.8, %v609_v59  ;;  %v1172_v0 = vpop.f32.mrb[4].mxu1  ;;  %1209 = vmatmul.mubr.f32.vlgmr.msra.gmra.mrb[8].mxu0 %v654_v61  ;;  %vm639_vm11 = vcmp.ge.f32.partialorder %v609_v59, 0.0 }
 0x1c9   : > { %v624_v1 = vadd.f32 %v1172_v0, %v1023_v49  ;;  %v618_v2 = vpop.f32.mrb[5].mxu1  ;;  %1339 = vmatpush3.bf16.msra.mxu0 %v1336_v34  ;;  %v656_v6 = vsel %vm640_vm12, %v614_v57, %v648_v62  ;;  %v1025_v57 = vld [vmem:[%s1694_s8] ss:$0 sm:$0xff] }
 0x1ca   : > { %v619_v3 = vadd.f32 %v1023_v49, %v618_v2  ;;  %v655_v4 = vsel %vm639_vm11, %v609_v59, %v647_v63  ;;  %1341 = vmatprep.subr.bf16.mxu0 %v1340_v36 }
 0x1cb   : > { %v650_v5 = vmul.f32 0.8, %v624_v1  ;;  %1211 = vmatprep.mubr.f32.mxu0 %v655_v4  ;;  %vm642_vm14 = vcmp.ge.f32.partialorder %v624_v1, 0.0 }
 0x1cc   : > { %v649_v7 = vmul.f32 0.8, %v619_v3  ;;  %v1175_v8 = vpop.f32.mrb[6].mxu1  ;;  %1212 = vmatmul.mubr.f32.gmra.mrb[10].mxu0 %v656_v6  ;;  %vm641_vm13 = vcmp.ge.f32.partialorder %v619_v3, 0.0 }
 0x1cd   : > { %v634_v9 = vadd.f32 %v1175_v8, %v1023_v49  ;;  %v628_v10 = vpop.f32.mrb[7].mxu1  ;;  %1343 = vmatpush3.bf16.msra.mxu0 %v1340_v36  ;;  %v658_v14 = vsel %vm642_vm14, %v624_v1, %v650_v5 }
 0x1ce   : > { %v629_v11 = vadd.f32 %v1023_v49, %v628_v10  ;;  %v657_v12 = vsel %vm641_vm13, %v619_v3, %v649_v7  ;;  %1345 = vmatprep.subr.bf16.mxu0 %v1613_v39 }
 0x1cf   : > { %v652_v13 = vmul.f32 0.8, %v634_v9  ;;  %1214 = vmatprep.mubr.f32.mxu0 %v657_v12  ;;  %vm644_vm1 = vcmp.ge.f32.partialorder %v634_v9, 0.0 }
 0x1d0   : > { %v651_v15 = vmul.f32 0.8, %v629_v11  ;;  %1215 = vmatmul.mubr.f32.gmra.mrb[12].mxu0 %v658_v14  ;;  %vm643_vm15 = vcmp.ge.f32.partialorder %v629_v11, 0.0 }
 0x1d1   : > { %1347 = vmatpush3.bf16.msra.mxu0 %v1613_v39  ;;  %v660_v17 = vsel %vm644_vm1, %v634_v9, %v652_v13 }
 0x1d2   : > { %v659_v16 = vsel %vm643_vm15, %v629_v11, %v651_v15  ;;  %1349 = vmatprep.subr.bf16.mxu0 %v1622_v42 }
 0x1d3   : > { %1217 = vmatprep.mubr.f32.mxu0 %v659_v16 }
 0x1d4   : > { %1218 = vmatmul.mubr.f32.gmra.mrb[14].mxu0 %v660_v17 }
 0x1d5   : > { %1351 = vmatpush3.bf16.msra.mxu0 %v1622_v42 }
 0x1d6   : > { %1353 = vmatprep.subr.bf16.mxu0 %v1632_v45 }
 0x1d9   : > { %1355 = vmatpush3.bf16.msra.mxu0 %v1632_v45 }
 0x1da   : > { %1357 = vmatprep.subr.bf16.mxu0 %v1356_v48 }
 0x1dd   : > { %1359 = vmatpush3.bf16.msra.mxu0 %v1356_v48 }
 0x1de   : > { %1361 = vmatprep.subr.bf16.mxu0 %v1360_v20 }
 0x1e1   : > { %1363 = vmatpush3.bf16.msra.mxu0 %v1360_v20 }
 0x1e2   : > { %1365 = vmatprep.subr.bf16.mxu0 %v1364_v23 }
 0x1e5   : > { %1367 = vmatpush3.bf16.msra.mxu0 %v1364_v23 }
 0x29b   : > { %v1210_v25 = vpop.f32.mrb[8].mxu0 }
 0x29c   : > { %v756_v26 = vadd.f32 %v1210_v25, %v1024_v24  ;;  %v750_v27 = vpop.f32.mrb[9].mxu0 }
 0x29d   : > { %v751_v28 = vadd.f32 %v1024_v24, %v750_v27 }
 0x29e   : > { %v798_v29 = vmul.f32 0.8, %v756_v26  ;;  %vm790_vm2 = vcmp.ge.f32.partialorder %v756_v26, 0.0 }
 0x29f   : > { %v797_v30 = vmul.f32 0.8, %v751_v28  ;;  %v1213_v31 = vpop.f32.mrb[10].mxu0  ;;  %vm789_vm3 = vcmp.ge.f32.partialorder %v751_v28, 0.0 }
 0x2a0   : > { %v766_v32 = vadd.f32 %v1213_v31, %v1024_v24  ;;  %v760_v33 = vpop.f32.mrb[11].mxu0  ;;  %v806_v36 = vsel %vm790_vm2, %v756_v26, %v798_v29 }
 0x2a1   : > { %v761_v34 = vadd.f32 %v1024_v24, %v760_v33  ;;  %v805_v35 = vsel %vm789_vm3, %v751_v28, %v797_v30 }
 0x2a2   : > { %v800_v37 = vmul.f32 0.8, %v766_v32  ;;  %1252 = vmatprep.mubr.f32.mxu0 %v805_v35  ;;  %vm792_vm4 = vcmp.ge.f32.partialorder %v766_v32, 0.0 }
 0x2a3   : > { %v799_v38 = vmul.f32 0.8, %v761_v34  ;;  %v1216_v39 = vpop.f32.mrb[12].mxu0  ;;  %1253 = vmatmul.mubr.f32.vlgmr.msra.gmra.mrb[16].mxu0 %v806_v36  ;;  %vm791_vm5 = vcmp.ge.f32.partialorder %v761_v34, 0.0 }
 0x2a4   : > { %v776_v40 = vadd.f32 %v1216_v39, %v1024_v24  ;;  %v770_v41 = vpop.f32.mrb[13].mxu0  ;;  %v808_v44 = vsel %vm792_vm4, %v766_v32, %v800_v37 }
 0x2a5   : > { %v771_v42 = vadd.f32 %v1024_v24, %v770_v41  ;;  %v807_v43 = vsel %vm791_vm5, %v761_v34, %v799_v38 }
 0x2a6   : > { %v802_v45 = vmul.f32 0.8, %v776_v40  ;;  %1255 = vmatprep.mubr.f32.mxu1 %v807_v43  ;;  %vm794_vm7 = vcmp.ge.f32.partialorder %v776_v40, 0.0 }
 0x2a7   : > { %v801_v46 = vmul.f32 0.8, %v771_v42  ;;  %v1219_v47 = vpop.f32.mrb[14].mxu0  ;;  %1256 = vmatmul.mubr.f32.vlgmr.msra.gmra.mrb[8].mxu1 %v808_v44  ;;  %vm793_vm6 = vcmp.ge.f32.partialorder %v771_v42, 0.0 }
 0x2a8   : > { %v786_v48 = vadd.f32 %v1219_v47, %v1024_v24  ;;  %v780_v49 = vpop.f32.mrb[15].mxu0  ;;  %v810_v53 = vsel %vm794_vm7, %v776_v40, %v802_v45 }
 0x2a9   : > { %v781_v50 = vadd.f32 %v1024_v24, %v780_v49  ;;  %v809_v51 = vsel %vm793_vm6, %v771_v42, %v801_v46 }
 0x2aa   : > { %v804_v52 = vmul.f32 0.8, %v786_v48  ;;  %1258 = vmatprep.mubr.f32.mxu1 %v809_v51  ;;  %vm796_vm9 = vcmp.ge.f32.partialorder %v786_v48, 0.0 }
 0x2ab   : > { %v803_v54 = vmul.f32 0.8, %v781_v50  ;;  %1259 = vmatmul.mubr.f32.gmra.mrb[10].mxu1 %v810_v53  ;;  %vm795_vm8 = vcmp.ge.f32.partialorder %v781_v50, 0.0 }
 0x2ac   : > { %v812_v56 = vsel %vm796_vm9, %v786_v48, %v804_v52 }
 0x2ad   : > { %v811_v55 = vsel %vm795_vm8, %v781_v50, %v803_v54 }
 0x2ae   : > { %1261 = vmatprep.mubr.f32.mxu1 %v811_v55 }
 0x2af   : > { %1262 = vmatmul.mubr.f32.gmra.mrb[12].mxu1 %v812_v56 }
 0x376   : > { %v1254_v58 = vpop.f32.mrb[16].mxu0 }
 0x377   : > { %v908_v59 = vadd.f32 %v1254_v58, %v1025_v57  ;;  %v902_v60 = vpop.f32.mrb[17].mxu0 }
 0x378   : > { %v903_v61 = vadd.f32 %v1025_v57, %v902_v60 }
 0x379   : > { %942 = vst.msk [vmem:[%s334_s21 + $0x8] sm:$0xff] %vm355_vm0, %v908_v59 }
 0x37a   : > { %941 = vst.msk [vmem:[%s334_s21] sm:$0xff] %vm355_vm0, %v903_v61  ;;  %v1257_v62 = vpop.f32.mrb[8].mxu1 }
 0x37b   : > { %v918_v63 = vadd.f32 %v1257_v62, %v1025_v57  ;;  %v912_v0 = vpop.f32.mrb[9].mxu1 }
 0x37c   : > { %v913_v1 = vadd.f32 %v1025_v57, %v912_v0 }
 0x37d   : > { %944 = vst.msk [vmem:[%s334_s21 + $0x18] sm:$0xff] %vm355_vm0, %v918_v63 }
 0x37e   : > { %943 = vst.msk [vmem:[%s334_s21 + $0x10] sm:$0xff] %vm355_vm0, %v913_v1  ;;  %v1260_v2 = vpop.f32.mrb[10].mxu1 }
 0x37f   : > { %v928_v3 = vadd.f32 %v1260_v2, %v1025_v57  ;;  %v922_v4 = vpop.f32.mrb[11].mxu1 }
 0x380   : > { %v923_v5 = vadd.f32 %v1025_v57, %v922_v4 }
 0x381   : > { %946 = vst.msk [vmem:[%s334_s21 + $0x28] sm:$0xff] %vm355_vm0, %v928_v3 }
 0x382   : > { %945 = vst.msk [vmem:[%s334_s21 + $0x20] sm:$0xff] %vm355_vm0, %v923_v5  ;;  %v1263_v6 = vpop.f32.mrb[12].mxu1 }
 0x383   : > { %v938_v7 = vadd.f32 %v1263_v6, %v1025_v57  ;;  %v932_v8 = vpop.f32.mrb[13].mxu1 }
 0x384   : > { %v933_v9 = vadd.f32 %v1025_v57, %v932_v8 }
 0x385   : > { %948 = vst.msk [vmem:[%s334_s21 + $0x38] sm:$0xff] %vm355_vm0, %v938_v7 }
 0x386   : > { %947 = vst.msk [vmem:[%s334_s21 + $0x30] sm:$0xff] %vm355_vm0, %v933_v9 }
 0x387 PF: > { %s19_s30 = sadd.s32 1, %s1398_s30  }
 0x388   : > { %p16_p4 = scmp.ge.s32.totalorder %s19_s30, 6  }
 0x38a   :  { %18 = sbr.rel (!%p16_p4) target bundleno = 1 (0x1), region = 86 }

</bundles_post_ra>
